<compile_context>
chip_gen: v7x
topology: tpu7x:2x2x1
jax: 0.10.0
libtpu: 0.0.40
codegen_flags: <defaults>
</compile_context>

<pallas_src>
import jax
import jax.numpy as jnp
from jax import lax
from jax.experimental import pallas as pl
from jax.experimental.pallas import tpu as pltpu


def _round_up(x, m):
    return ((x + m - 1) // m) * m


# ---------------------------------------------------------------------------
# Pallas kernel: group convolution as n*n tap-shifted GEMMs with fused bias.
# ---------------------------------------------------------------------------
def _make_tap_conv_kernel(n, w_padded, m_out):
    """Returns a kernel computing, for one batch item,
       out[co, q] = bias[co] + sum_{i,j,ci} W[i,j,co,ci] * x_flat[ci, q + i*Wp + j]
    where q indexes the flattened (stride-1) output grid.  Taps are unrolled
    statically, so every slice has a compile-time lane offset."""
    taps = [(i, j) for i in range(n) for j in range(n)]

    def kernel(x_ref, w_ref, b_ref, o_ref):
        # x_ref: (1, Cin, L)      padded+flattened input, one batch item (VMEM resident)
        # w_ref: (n*n, Cout, Cin) tap-major planar filters (tiny, resident)
        # b_ref: (Cout, 1)        per-output-channel bias
        # o_ref: (1, Cout, M)     lane-dense output tile (M multiple of 128)
        x = x_ref[0]                                     # (Cin, L) -> few vregs
        cout = o_ref.shape[1]
        acc = jnp.zeros((cout, m_out), jnp.float32)
        for t, (i, j) in enumerate(taps):
            off = i * w_padded + j                       # static python int
            acc = acc + jnp.dot(w_ref[t], x[:, off:off + m_out],
                                preferred_element_type=jnp.float32)
        o_ref[0] = (acc + b_ref[...]).astype(o_ref.dtype)

    return kernel


def group_conv_pallas(x_planar, planar_filters, bias_vec, stride, padding):
    """x_planar: (B, Cin, H, W); planar_filters: (Cout, Cin, n, n);
    bias_vec: (Cout,). Returns (B, Cout, Ho, Wo)."""
    B, Cin, H, W = x_planar.shape
    Cout, _, n, _ = planar_filters.shape
    Hp, Wp = H + 2 * padding, W + 2 * padding
    Ho1, Wo1 = Hp - n + 1, Wp - n + 1                 # stride-1 output extents
    Ho = (H + 2 * padding - n) // stride + 1
    Wo = (W + 2 * padding - n) // stride + 1

    M = _round_up(Ho1 * Wp, 128)                      # lane-dense output width
    off_max = (n - 1) * Wp + (n - 1)
    L = _round_up(M + off_max, 128)                   # input length incl. halo tail

    # One small pad of the *input* (not of an n^2-expanded patches tensor):
    # spatial pad -> flatten spatial -> zero tail so all tap-shifted reads are
    # in-bounds.  ~1.2x the input, fused by XLA into a couple of cheap copies.
    xp = jnp.pad(x_planar, ((0, 0), (0, 0), (padding, padding), (padding, padding)))
    x_flat = xp.reshape(B, Cin, Hp * Wp)
    x_flat = jnp.pad(x_flat, ((0, 0), (0, 0), (0, L - Hp * Wp)))

    # Tap-major planar weights: (n*n, Cout, Cin), tap index t = i*n + j.
    w_taps = jnp.transpose(planar_filters, (2, 3, 0, 1)).reshape(n * n, Cout, Cin)
    bias_col = bias_vec.reshape(Cout, 1).astype(jnp.float32)

    y = pl.pallas_call(
        _make_tap_conv_kernel(n, Wp, M),
        out_shape=jax.ShapeDtypeStruct((B, Cout, M), jnp.float32),
        grid_spec=pltpu.PrefetchScalarGridSpec(
            num_scalar_prefetch=0,
            grid=(B,),                                 # batch parallel (megacore shards it)
            in_specs=[
                pl.BlockSpec((1, Cin, L), lambda b: (b, 0, 0)),
                pl.BlockSpec((n * n, Cout, Cin), lambda b: (0, 0, 0)),
                pl.BlockSpec((Cout, 1), lambda b: (0, 0)),
            ],
            out_specs=pl.BlockSpec((1, Cout, M), lambda b: (b, 0, 0)),
        ),
        compiler_params=pltpu.CompilerParams(
            dimension_semantics=("parallel",)),
    )(x_flat, w_taps, bias_col)
    # TODO(synk): for large H*W or Cin, add a row-tile grid axis with a halo'd
    # manual DMA instead of keeping the whole padded plane resident per step.

    # Epilogue: drop the padded lanes (w >= Wo1) and tail rows; this reshape is
    # layout-preserving (no lane/sublane transpose).  Strided conv == stride-1
    # conv subsampled, matching F.conv2d semantics.
    y = y[:, :, :Ho1 * Wp].reshape(B, Cout, Ho1, Wp)[:, :, :, :Wo1]
    if stride != 1:
        y = y[:, :, ::stride, ::stride]
    return y[:, :, :Ho, :Wo]


# ---------------------------------------------------------------------------
# Glue: filter synthesis (tiny einsum), equivariant roll, full forward
# ---------------------------------------------------------------------------
def apply_group_roll(filters, Sp):
    """Equivariant roll: for each output group element s', roll the input group
    axis S (dim 3 of (Kp,Sp,K,S,n,n)) by s'.  Stand-in for transformer.apply_roll."""
    return jnp.stack(
        [jnp.roll(filters[:, sp], shift=sp, axis=2) for sp in range(Sp)],
        axis=1)


def basis_equiv_conv_forward(x, filter_coefs, normalized_basis, bias,
                             stride, padding):
    """x: (B, K, S, H, W) -> y: (B, Kp, Sp, Ho, Wo)."""
    B, K, S, H, W = x.shape
    Kp = filter_coefs.shape[0]
    Sp, D, n, _ = normalized_basis.shape

    # get_transformed_filters(): ~14K MACs -> plain einsum, fused by XLA.
    filters = jnp.einsum('adks,bdij->abksij', filter_coefs, normalized_basis)
    if S != 1:
        filters = apply_group_roll(filters, Sp)

    # group_convolve(): planar filters (Kp*Sp, K*S, n, n), contiguous (k', s')
    planar = filters.reshape(Kp * Sp, K * S, n, n)

    # bias per k', broadcast over s' (c_out = k'*Sp + s')
    bias_vec = jnp.repeat(bias, Sp)

    y = group_conv_pallas(x.reshape(B, K * S, H, W), planar, bias_vec,
                          stride, padding)                     # (B, Kp*Sp, Ho, Wo)
    Ho, Wo = y.shape[-2], y.shape[-1]
    return y.reshape(B, Kp, Sp, Ho, Wo)                        # pure reshape, no transpose


# ---------------------------------------------------------------------------
# Pure-JAX reference (for verification)
# ---------------------------------------------------------------------------
def reference_forward(x, filter_coefs, normalized_basis, bias, stride, padding):
    B, K, S, H, W = x.shape
    Kp = filter_coefs.shape[0]
    Sp, _, n, _ = normalized_basis.shape
    filters = jnp.einsum('adks,bdij->abksij', filter_coefs, normalized_basis)
    if S != 1:
        filters = apply_group_roll(filters, Sp)
    planar = filters.reshape(Kp * Sp, K * S, n, n)
    y = lax.conv_general_dilated(
        x.reshape(B, K * S, H, W), planar,
        window_strides=(stride, stride),
        padding=[(padding, padding), (padding, padding)],
        dimension_numbers=('NCHW', 'OIHW', 'NCHW'))
    y = y.reshape(B, Kp, Sp, y.shape[-2], y.shape[-1])
    return y + bias.reshape(Kp, 1, 1, 1)


# ---------------------------------------------------------------------------
if __name__ == "__main__":
    # Small shapes consistent with the module (layer > 1 case so the group roll
    # is exercised): in_shape = (K=4, S=4), nr_filters K'=4, group size S'=4,
    # nr_basis D=6, filter_sz n=3, stride 1, padding 1.
    B, K, S, H, W = 2, 4, 4, 16, 16
    Kp, Sp, D, n = 4, 4, 6, 3
    stride, padding = 1, 1

    key = jax.random.PRNGKey(0)
    k1, k2, k3, k4 = jax.random.split(key, 4)

    # Deterministic init following reset_parameters() (filter_sz != 1 branch):
    basis_std = 0.1
    std = float(jnp.sqrt(2.0 / (D * K * basis_std * basis_std)) / 10.0)
    filter_coefs = std * jax.random.normal(k1, (Kp, D, K, S), jnp.float32)
    bias = std * jax.random.normal(k2, (Kp,), jnp.float32)

    # Stand-in for basis_ae.get_normalized_basis(): unit-L2 basis per (s', d).
    # TODO(synk): the real basis_ae / transformer are external modules; their
    # normalized basis and roll action are synthesized deterministically here.
    raw_basis = jax.random.normal(k3, (Sp, D, n, n), jnp.float32)
    normalized_basis = raw_basis / jnp.linalg.norm(
        raw_basis.reshape(Sp, D, -1), axis=-1).reshape(Sp, D, 1, 1)

    x = jax.random.normal(k4, (B, K, S, H, W), jnp.float32)

    fwd = jax.jit(basis_equiv_conv_forward, static_argnums=(4, 5))
    y = fwd(x, filter_coefs, normalized_basis, bias, stride, padding)
    y = jax.block_until_ready(y)

    y_ref = reference_forward(x, filter_coefs, normalized_basis, bias,
                              stride, padding)
    assert y.shape == (B, Kp, Sp, H, W), y.shape
    assert jnp.allclose(y, y_ref, atol=1e-3, rtol=1e-3), (
        float(jnp.max(jnp.abs(y - y_ref))))
    print("KERNEL_OK")
</pallas_src>

<mosaic_0001>
module attributes {stable_mosaic.version = 11 : i64} {
  func.func @kernel(%arg0: i32, %arg1: memref<1x16x512xf32, #tpu.memory_space<vmem>>, %arg2: memref<9x16x16xf32, #tpu.memory_space<vmem>>, %arg3: memref<16x1xf32, #tpu.memory_space<vmem>>, %arg4: memref<1x16x384xf32, #tpu.memory_space<vmem>>) attributes {dimension_semantics = [#tpu.dimension_semantics<parallel>], iteration_bounds = array<i64: 2>, scalar_prefetch = 0 : i64, scratch_operands = 0 : i64, tpu.core_type = #tpu.core_type<tc>, window_params = [{transform_indices = @transform_0, window_bounds = array<i64: 1, 16, 512>}, {pipeline_mode = #tpu.pipeline_mode<synchronous>, transform_indices = @transform_1, window_bounds = array<i64: 9, 16, 16>}, {pipeline_mode = #tpu.pipeline_mode<synchronous>, transform_indices = @transform_2, window_bounds = array<i64: 16, 1>}, {transform_indices = @transform_3, window_bounds = array<i64: 1, 16, 384>}]} {
    %c0 = arith.constant 0 : index
    %c0_0 = arith.constant 0 : index
    %c0_1 = arith.constant 0 : index
    %0 = vector.load %arg1[%c0, %c0_0, %c0_1] : memref<1x16x512xf32, #tpu.memory_space<vmem>>, vector<1x16x512xf32>
    %1 = vector.shape_cast %0 : vector<1x16x512xf32> to vector<16x512xf32>
    %cst = arith.constant 0.000000e+00 : f32
    %2 = vector.broadcast %cst : f32 to vector<16x384xf32>
    %c0_2 = arith.constant 0 : index
    %c0_3 = arith.constant 0 : index
    %c0_4 = arith.constant 0 : index
    %3 = vector.load %arg2[%c0_2, %c0_3, %c0_4] : memref<9x16x16xf32, #tpu.memory_space<vmem>>, vector<1x16x16xf32>
    %4 = vector.shape_cast %3 : vector<1x16x16xf32> to vector<16x16xf32>
    %5 = vector.extract_strided_slice %1 {offsets = [0, 0], sizes = [16, 384], strides = [1, 1]} : vector<16x512xf32> to vector<16x384xf32>
    %cst_5 = arith.constant dense<0.000000e+00> : vector<16x384xf32>
    %6 = tpu.matmul %4, %5, %cst_5 {dimension_numbers = #tpu.dot_dimension_numbers<[1], [0], [0], [1], [0, 0, 1, 1], [], []>} : vector<16x16xf32>, vector<16x384xf32>, vector<16x384xf32> -> vector<16x384xf32>
    %7 = arith.addf %2, %6 : vector<16x384xf32>
    %c1 = arith.constant 1 : index
    %c0_6 = arith.constant 0 : index
    %c0_7 = arith.constant 0 : index
    %8 = vector.load %arg2[%c1, %c0_6, %c0_7] : memref<9x16x16xf32, #tpu.memory_space<vmem>>, vector<1x16x16xf32>
    %9 = vector.shape_cast %8 : vector<1x16x16xf32> to vector<16x16xf32>
    %10 = vector.extract_strided_slice %1 {offsets = [0, 1], sizes = [16, 384], strides = [1, 1]} : vector<16x512xf32> to vector<16x384xf32>
    %cst_8 = arith.constant dense<0.000000e+00> : vector<16x384xf32>
    %11 = tpu.matmul %9, %10, %cst_8 {dimension_numbers = #tpu.dot_dimension_numbers<[1], [0], [0], [1], [0, 0, 1, 1], [], []>} : vector<16x16xf32>, vector<16x384xf32>, vector<16x384xf32> -> vector<16x384xf32>
    %12 = arith.addf %7, %11 : vector<16x384xf32>
    %c2 = arith.constant 2 : index
    %c0_9 = arith.constant 0 : index
    %c0_10 = arith.constant 0 : index
    %13 = vector.load %arg2[%c2, %c0_9, %c0_10] : memref<9x16x16xf32, #tpu.memory_space<vmem>>, vector<1x16x16xf32>
    %14 = vector.shape_cast %13 : vector<1x16x16xf32> to vector<16x16xf32>
    %15 = vector.extract_strided_slice %1 {offsets = [0, 2], sizes = [16, 384], strides = [1, 1]} : vector<16x512xf32> to vector<16x384xf32>
    %cst_11 = arith.constant dense<0.000000e+00> : vector<16x384xf32>
    %16 = tpu.matmul %14, %15, %cst_11 {dimension_numbers = #tpu.dot_dimension_numbers<[1], [0], [0], [1], [0, 0, 1, 1], [], []>} : vector<16x16xf32>, vector<16x384xf32>, vector<16x384xf32> -> vector<16x384xf32>
    %17 = arith.addf %12, %16 : vector<16x384xf32>
    %c3 = arith.constant 3 : index
    %c0_12 = arith.constant 0 : index
    %c0_13 = arith.constant 0 : index
    %18 = vector.load %arg2[%c3, %c0_12, %c0_13] : memref<9x16x16xf32, #tpu.memory_space<vmem>>, vector<1x16x16xf32>
    %19 = vector.shape_cast %18 : vector<1x16x16xf32> to vector<16x16xf32>
    %20 = vector.extract_strided_slice %1 {offsets = [0, 18], sizes = [16, 384], strides = [1, 1]} : vector<16x512xf32> to vector<16x384xf32>
    %cst_14 = arith.constant dense<0.000000e+00> : vector<16x384xf32>
    %21 = tpu.matmul %19, %20, %cst_14 {dimension_numbers = #tpu.dot_dimension_numbers<[1], [0], [0], [1], [0, 0, 1, 1], [], []>} : vector<16x16xf32>, vector<16x384xf32>, vector<16x384xf32> -> vector<16x384xf32>
    %22 = arith.addf %17, %21 : vector<16x384xf32>
    %c4 = arith.constant 4 : index
    %c0_15 = arith.constant 0 : index
    %c0_16 = arith.constant 0 : index
    %23 = vector.load %arg2[%c4, %c0_15, %c0_16] : memref<9x16x16xf32, #tpu.memory_space<vmem>>, vector<1x16x16xf32>
    %24 = vector.shape_cast %23 : vector<1x16x16xf32> to vector<16x16xf32>
    %25 = vector.extract_strided_slice %1 {offsets = [0, 19], sizes = [16, 384], strides = [1, 1]} : vector<16x512xf32> to vector<16x384xf32>
    %cst_17 = arith.constant dense<0.000000e+00> : vector<16x384xf32>
    %26 = tpu.matmul %24, %25, %cst_17 {dimension_numbers = #tpu.dot_dimension_numbers<[1], [0], [0], [1], [0, 0, 1, 1], [], []>} : vector<16x16xf32>, vector<16x384xf32>, vector<16x384xf32> -> vector<16x384xf32>
    %27 = arith.addf %22, %26 : vector<16x384xf32>
    %c5 = arith.constant 5 : index
    %c0_18 = arith.constant 0 : index
    %c0_19 = arith.constant 0 : index
    %28 = vector.load %arg2[%c5, %c0_18, %c0_19] : memref<9x16x16xf32, #tpu.memory_space<vmem>>, vector<1x16x16xf32>
    %29 = vector.shape_cast %28 : vector<1x16x16xf32> to vector<16x16xf32>
    %30 = vector.extract_strided_slice %1 {offsets = [0, 20], sizes = [16, 384], strides = [1, 1]} : vector<16x512xf32> to vector<16x384xf32>
    %cst_20 = arith.constant dense<0.000000e+00> : vector<16x384xf32>
    %31 = tpu.matmul %29, %30, %cst_20 {dimension_numbers = #tpu.dot_dimension_numbers<[1], [0], [0], [1], [0, 0, 1, 1], [], []>} : vector<16x16xf32>, vector<16x384xf32>, vector<16x384xf32> -> vector<16x384xf32>
    %32 = arith.addf %27, %31 : vector<16x384xf32>
    %c6 = arith.constant 6 : index
    %c0_21 = arith.constant 0 : index
    %c0_22 = arith.constant 0 : index
    %33 = vector.load %arg2[%c6, %c0_21, %c0_22] : memref<9x16x16xf32, #tpu.memory_space<vmem>>, vector<1x16x16xf32>
    %34 = vector.shape_cast %33 : vector<1x16x16xf32> to vector<16x16xf32>
    %35 = vector.extract_strided_slice %1 {offsets = [0, 36], sizes = [16, 384], strides = [1, 1]} : vector<16x512xf32> to vector<16x384xf32>
    %cst_23 = arith.constant dense<0.000000e+00> : vector<16x384xf32>
    %36 = tpu.matmul %34, %35, %cst_23 {dimension_numbers = #tpu.dot_dimension_numbers<[1], [0], [0], [1], [0, 0, 1, 1], [], []>} : vector<16x16xf32>, vector<16x384xf32>, vector<16x384xf32> -> vector<16x384xf32>
    %37 = arith.addf %32, %36 : vector<16x384xf32>
    %c7 = arith.constant 7 : index
    %c0_24 = arith.constant 0 : index
    %c0_25 = arith.constant 0 : index
    %38 = vector.load %arg2[%c7, %c0_24, %c0_25] : memref<9x16x16xf32, #tpu.memory_space<vmem>>, vector<1x16x16xf32>
    %39 = vector.shape_cast %38 : vector<1x16x16xf32> to vector<16x16xf32>
    %40 = vector.extract_strided_slice %1 {offsets = [0, 37], sizes = [16, 384], strides = [1, 1]} : vector<16x512xf32> to vector<16x384xf32>
    %cst_26 = arith.constant dense<0.000000e+00> : vector<16x384xf32>
    %41 = tpu.matmul %39, %40, %cst_26 {dimension_numbers = #tpu.dot_dimension_numbers<[1], [0], [0], [1], [0, 0, 1, 1], [], []>} : vector<16x16xf32>, vector<16x384xf32>, vector<16x384xf32> -> vector<16x384xf32>
    %42 = arith.addf %37, %41 : vector<16x384xf32>
    %c8 = arith.constant 8 : index
    %c0_27 = arith.constant 0 : index
    %c0_28 = arith.constant 0 : index
    %43 = vector.load %arg2[%c8, %c0_27, %c0_28] : memref<9x16x16xf32, #tpu.memory_space<vmem>>, vector<1x16x16xf32>
    %44 = vector.shape_cast %43 : vector<1x16x16xf32> to vector<16x16xf32>
    %45 = vector.extract_strided_slice %1 {offsets = [0, 38], sizes = [16, 384], strides = [1, 1]} : vector<16x512xf32> to vector<16x384xf32>
    %cst_29 = arith.constant dense<0.000000e+00> : vector<16x384xf32>
    %46 = tpu.matmul %44, %45, %cst_29 {dimension_numbers = #tpu.dot_dimension_numbers<[1], [0], [0], [1], [0, 0, 1, 1], [], []>} : vector<16x16xf32>, vector<16x384xf32>, vector<16x384xf32> -> vector<16x384xf32>
    %47 = arith.addf %42, %46 : vector<16x384xf32>
    %c0_30 = arith.constant 0 : index
    %c0_31 = arith.constant 0 : index
    %48 = vector.load %arg3[%c0_30, %c0_31] : memref<16x1xf32, #tpu.memory_space<vmem>>, vector<16x1xf32>
    %49 = vector.broadcast %48 : vector<16x1xf32> to vector<16x384xf32>
    %50 = arith.addf %47, %49 : vector<16x384xf32>
    %c0_32 = arith.constant 0 : index
    %c0_33 = arith.constant 0 : index
    %c0_34 = arith.constant 0 : index
    %51 = vector.load %arg4[%c0_32, %c0_33, %c0_34] : memref<1x16x384xf32, #tpu.memory_space<vmem>>, vector<1x16x384xf32>
    %52 = vector.shape_cast %51 : vector<1x16x384xf32> to vector<16x384xf32>
    %53 = vector.shape_cast %50 : vector<16x384xf32> to vector<1x16x384xf32>
    tpu.vector_store %arg4[%c0_32, %c0_33, %c0_34], %53 {strides = array<i32>} : memref<1x16x384xf32, #tpu.memory_space<vmem>>, vector<1x16x384xf32>,
    return
  }
  func.func @transform_0(%arg0: i32) -> (i32, i32, i32) {
    %c0_i32 = arith.constant 0 : i32
    %c0_i32_0 = arith.constant 0 : i32
    %c0_i32_1 = arith.constant 0 : i32
    return %arg0, %c0_i32, %c0_i32_0 : i32, i32, i32
  }
  func.func @transform_1(%arg0: i32) -> (i32, i32, i32) {
    %c0_i32 = arith.constant 0 : i32
    %c0_i32_0 = arith.constant 0 : i32
    %c0_i32_1 = arith.constant 0 : i32
    %c0_i32_2 = arith.constant 0 : i32
    return %c0_i32, %c0_i32_0, %c0_i32_1 : i32, i32, i32
  }
  func.func @transform_2(%arg0: i32) -> (i32, i32) {
    %c0_i32 = arith.constant 0 : i32
    %c0_i32_0 = arith.constant 0 : i32
    %c0_i32_1 = arith.constant 0 : i32
    return %c0_i32, %c0_i32_0 : i32, i32
  }
  func.func @transform_3(%arg0: i32) -> (i32, i32, i32) {
    %c0_i32 = arith.constant 0 : i32
    %c0_i32_0 = arith.constant 0 : i32
    %c0_i32_1 = arith.constant 0 : i32
    return %arg0, %c0_i32, %c0_i32_0 : i32, i32, i32
  }
}

</mosaic_0001>

<bundles_post_ra>
// kernel: basis_equiv_conv_forward.1
= control target key start
LH: loop header
LB: loop body
LE: loop exit
PB: predicated region body
PF: predicated region fallthrough
CT: control target
= control target key end

     0   :  { %s2490_s12 = smov 0   ;;  %s2729_s0 = inlined_call_operand.vmem [shape: f32[2,16,512], index: 0, kind: input, shape index: {}]   ;;  %s2730_s1 = inlined_call_operand.vmem [shape: f32[9,16,16], index: 1, kind: input, shape index: {}]   ;;  %s2731_s2 = inlined_call_operand.vmem [shape: f32[16,1], index: 2, kind: input, shape index: {}]   ;;  %s2732_s3 = inlined_call_operand.vmem [shape: f32[2,16,384], index: 3, kind: output, shape index: {}]  }
   0x1 LB: > { %s1989_s13 = sadd.s32 4294967295, %s2458_s12   ;;  %p1993_p0 = scmp.ge.s32.totalorder %s2458_s12, 1  ;;  %s2458_s12 = sphi %s2490_s12, %s13_s12  }
   0x2   : > { %p137_p1 = scmp.lt.s32.totalorder %s2458_s12, 3 }
   0x4   : > { %p138_p2 = pnand %p1993_p0, %p137_p1 }
   0x5   : > { %p161_p3 = scmp.lt.s32.totalorder (!%p138_p2), %s1989_s13, 1  ;;  %s2460_s18 = smov (!%p138_p2), 127   ;;  %v2461_v12 = vmov (!%p138_p2), 0.0   ;;  %v1910_v16 = vld [vmem:[%s2731_s2] sm:$0xff] (!%p138_p2)  ;;  %v1911_v17 = vld [vmem:[%s2731_s2 + $0x8] sm:$0xff] (!%p138_p2)  ;;  %v2469_v18 = vmov (!%p138_p2), 0  }
   0x6   : > { %141 = sbr.rel (%p138_p2) target bundleno = 439 (0x1b7), region = 32  ;;  %292 = vmatprep.mubr.f32.mxu1 (!%p138_p2), %v2461_v12  ;;  %640 = vmatprep.mubr.f32.mxu0 (!%p138_p2), %v2461_v12  ;;  %s2462_s19 = smov (!%p138_p2), 126   ;;  %vm208_vm0 = vcmask (!%p138_p2), 1039360   ;;  %vm557_vm1 = vcmask (!%p138_p2), 1031168   ;;  %v1997_v46 = vld [vmem:[%s2730_s1 + $0x10] sm:$0xff] (!%p138_p2)  ;;  %vm221_vm2 = vcmask (!%p138_p2), 130048  }
   0x7   : > { %s2463_s20 = smov (!%p138_p2), 110   ;;  %s2464_s21 = smov (!%p138_p2), 109   ;;  %2450 = vset.pattern.permute.xlu0 (!%p138_p2), %v2469_v18  ;;  %2451 = vset.pattern.permute.xlu1 (!%p138_p2), %v2469_v18  ;;  %v1998_v54 = vld [vmem:[%s2730_s1 + $0x18] sm:$0xff] (!%p138_p2)  ;;  %vm753_vm3 = vcmask (!%p138_p2), 900096   ;;  %vm949_vm4 = vcmask (!%p138_p2), 891904   ;;  %vm1145_vm5 = vcmask (!%p138_p2), 883712  }
   0x8   : > { %s2465_s22 = smov (!%p138_p2), 108   ;;  %s2466_s23 = smov (!%p138_p2), 92   ;;  %vm1341_vm6 = vcmask (!%p138_p2), 752640   ;;  %vm1537_vm7 = vcmask (!%p138_p2), 744448   ;;  %vm1733_vm8 = vcmask (!%p138_p2), 736256  }
   0x9   : > { %s2467_s24 = smov (!%p138_p2), 91   ;;  %s2468_s25 = smov (!%p138_p2), 90  }
   0xd   : > { %s2734_s13 = smov (!%p161_p3, %s1989_s13), 1 }
   0xe   : > { %s2051_s14 = sshll.u32 %s2734_s13, 6  ;;  %s2271_s16 = smul.u32 48, %s2734_s13 }
   0xf   : > { %s165_s17 = scalar_lea.vmem %s2729_s0, %s2051_s14 }
  0x10   : > { %v2504_v0 = vld [vmem:[%s165_s17 + $0x8] sm:$0xff]  ;;  %v173_v1 = vld [vmem:[%s165_s17 + $0x10] sm:$0xff]  ;;  %v2506_v2 = vld [vmem:[%s165_s17] sm:$0xff] }
  0x11   : > { %v2290_v3 = vpack.i.bf16 %v173_v1, %v2504_v0  ;;  %v2509_v4 = vld [vmem:[%s165_s17 + $0x20] sm:$0xff]  ;;  %v2511_v5 = vld [vmem:[%s165_s17 + $0x28] sm:$0xff]  ;;  %v177_v6 = vld [vmem:[%s165_s17 + $0x30] sm:$0xff] }
  0x12   : > { %v2300_v7 = vpack.i.bf16 %v2509_v4, %v2506_v2  ;;  %v174_v8 = vld [vmem:[%s165_s17 + $0x18] sm:$0xff]  ;;  %v2295_v10 = vpack.i.bf16 %v177_v6, %v2511_v5  ;;  %v2159_v13 = vpack.c.bf16 %v2511_v5, %v2504_v0  ;;  %v2161_v14 = vpack.c.bf16 %v2509_v4, %v2506_v2 }
  0x13   : > { %v178_v9 = vld [vmem:[%s165_s17 + $0x38] sm:$0xff]  ;;  %2291 = vrot.lane.b32.xlu0 %v2290_v3, %s2460_s18  ;;  %v2522_v15 = vpack.c.bf16 %v177_v6, %v173_v1  ;;  %v2549_v6 = vld [vmem:[%s2730_s1 + $0x20] sm:$0xff] }
  0x14   : > { %2301 = vrot.lane.b32.xlu1 %v2300_v7, %s2460_s18  ;;  %v2305_v11 = vpack.i.bf16 %v178_v9, %v174_v8 }
  0x17   : > { %2296 = vrot.lane.b32.xlu0 %v2295_v10, %s2460_s18 }
  0x18   : > { %2306 = vrot.lane.b32.xlu1 %v2305_v11, %s2460_s18 }
  0x1b   : > { %2311 = vrot.lane.b32.xlu0 %v2290_v3, %s2462_s19 }
  0x1c   : > { %2316 = vrot.lane.b32.xlu1 %v2295_v10, %s2462_s19 }
  0x1f   : > { %2321 = vrot.lane.b32.xlu0 %v2300_v7, %s2462_s19 }
  0x20   : > { %2326 = vrot.lane.b32.xlu1 %v2305_v11, %s2462_s19  ;;  %s170_s19 = scalar_lea.vmem %s2732_s3, %s2271_s16 }
  0x23   : > { %2331 = vrot.lane.b32.xlu0 %v2290_v3, %s2463_s20 }
  0x24   : > { %2336 = vrot.lane.b32.xlu1 %v2295_v10, %s2463_s20 }
  0x27   : > { %2341 = vrot.lane.b32.xlu0 %v2300_v7, %s2463_s20 }
  0x28   : > { %2346 = vrot.lane.b32.xlu1 %v2305_v11, %s2463_s20 }
  0x2b   : > { %2351 = vrot.lane.b32.xlu0 %v2290_v3, %s2464_s21 }
  0x2c   : > { %2356 = vrot.lane.b32.xlu1 %v2295_v10, %s2464_s21 }
  0x2f   : > { %2361 = vrot.lane.b32.xlu0 %v2300_v7, %s2464_s21 }
  0x30   : > { %2366 = vrot.lane.b32.xlu1 %v2305_v11, %s2464_s21 }
  0x33   : > { %2371 = vrot.lane.b32.xlu0 %v2290_v3, %s2465_s22 }
  0x34   : > { %2376 = vrot.lane.b32.xlu1 %v2295_v10, %s2465_s22 }
  0x37   : > { %2381 = vrot.lane.b32.xlu0 %v2300_v7, %s2465_s22 }
  0x38   : > { %2386 = vrot.lane.b32.xlu1 %v2305_v11, %s2465_s22 }
  0x3b   : > { %2391 = vrot.lane.b32.xlu0 %v2290_v3, %s2466_s23 }
  0x3c   : > { %2396 = vrot.lane.b32.xlu1 %v2295_v10, %s2466_s23 }
  0x3f   : > { %2401 = vrot.lane.b32.xlu0 %v2300_v7, %s2466_s23 }
  0x40   : > { %2406 = vrot.lane.b32.xlu1 %v2305_v11, %s2466_s23 }
  0x43   : > { %2411 = vrot.lane.b32.xlu0 %v2290_v3, %s2467_s24 }
  0x44   : > { %2416 = vrot.lane.b32.xlu1 %v2295_v10, %s2467_s24 }
  0x47   : > { %2421 = vrot.lane.b32.xlu0 %v2300_v7, %s2467_s24 }
  0x48   : > { %2426 = vrot.lane.b32.xlu1 %v2305_v11, %s2467_s24 }
  0x4b   : > { %2431 = vrot.lane.b32.xlu0 %v2290_v3, %s2468_s25 }
  0x4c   : > { %2436 = vrot.lane.b32.xlu1 %v2295_v10, %s2468_s25 }
  0x4f   : > { %2441 = vrot.lane.b32.xlu0 %v2300_v7, %s2468_s25 }
  0x50   : > { %2446 = vrot.lane.b32.xlu1 %v2305_v11, %s2468_s25 }
  0x53   : > { %1914 = vperm.xlu0 %2450, %v1910_v16  }
  0x54   : > { %1919 = vperm.xlu1 %2451, %v1911_v17   ;;  %v2563_v17 = vld [vmem:[%s2730_s1 + $0x28] sm:$0xff] }
  0x85   : > { %v2292_v19 = vpop.permute.xlu0 %2291 }
  0x86   : > { %v2302_v20 = vpop.permute.xlu1 %2301  ;;  %v2294_v21 = vunpack.i.h.bf16 %v2292_v19  ;;  %v2293_v22 = vunpack.i.l.bf16 %v2292_v19 }
  0x87   : > { %v2304_v23 = vunpack.i.h.bf16 %v2302_v20  ;;  %v2303_v24 = vunpack.i.l.bf16 %v2302_v20  ;;  %v179_v20 = vld [vmem:[%s2730_s1] sm:$0xff] }
  0x88   : > { %v210_v31 = vsel %vm208_vm0, %v2293_v22, %v2294_v21 }
  0x89   : > { %v2297_v25 = vpop.permute.xlu0 %2296  ;;  %v209_v33 = vsel %vm208_vm0, %v2303_v24, %v2293_v22 }
  0x8a   : > { %v2299_v26 = vunpack.i.h.bf16 %v2297_v25  ;;  %v2298_v27 = vunpack.i.l.bf16 %v2297_v25  ;;  %v2307_v28 = vpop.permute.xlu1 %2306 }
  0x8b   : > { %v2309_v29 = vunpack.i.h.bf16 %v2307_v28  ;;  %v2308_v30 = vunpack.i.l.bf16 %v2307_v28  ;;  %v2581_v28 = vld [vmem:[%s2730_s1 + $0x30] sm:$0xff] }
  0x8c   : > { %v213_v32 = vsel %vm208_vm0, %v2298_v27, %v2299_v26  ;;  %v212_v34 = vsel %vm208_vm0, %v2304_v23, %v2298_v27 }
  0x8d   : > { %v2312_v35 = vpop.permute.xlu0 %2311  ;;  %v2151_v36 = vpack.c.bf16 %v213_v32, %v210_v31  ;;  %v2153_v37 = vpack.c.bf16 %v212_v34, %v209_v33  ;;  %v211_v38 = vsel %vm208_vm0, %v2294_v21, %v2308_v30  ;;  %v214_v39 = vsel %vm208_vm0, %v2299_v26, %v2309_v29  ;;  %v180_v29 = vld [vmem:[%s2730_s1 + $0x8] sm:$0xff] }
  0x8e   : > { %v2314_v40 = vunpack.i.h.bf16 %v2312_v35  ;;  %v2313_v41 = vunpack.i.l.bf16 %v2312_v35  ;;  %v2317_v42 = vpop.permute.xlu1 %2316  ;;  %v2155_v45 = vpack.c.bf16 %v214_v39, %v211_v38  ;;  %v2600_v38 = vld [vmem:[%s2730_s1 + $0x38] sm:$0xff] }
  0x8f   : > { %2152 = vmatprep.subr.bf16.mxu1 %v2151_v36  ;;  %v2319_v43 = vunpack.i.h.bf16 %v2317_v42  ;;  %v2318_v44 = vunpack.i.l.bf16 %v2317_v42 }
  0x90   : > { %2154 = vmatpush1.bf16.msra.mxu1 %v2153_v37  ;;  %v559_v47 = vsel %vm557_vm1, %v2313_v41, %v2314_v40 }
  0x91   : > { %v2322_v48 = vpop.permute.xlu0 %2321  ;;  %2156 = vmatprep.subr.bf16.mxu1 %v2155_v45  ;;  %v562_v49 = vsel %vm557_vm1, %v2318_v44, %v2319_v43 }
  0x92   : > { %v2324_v50 = vunpack.i.h.bf16 %v2322_v48  ;;  %v2323_v51 = vunpack.i.l.bf16 %v2322_v48  ;;  %v2327_v52 = vpop.permute.xlu1 %2326  ;;  %v2167_v53 = vpack.c.bf16 %v562_v49, %v559_v47 }
  0x93   : > { %1999 = vmatmul.mubr.msk.f32.vlgmr.msra.gmra.mrb[0].mxu1 %vm221_vm2, %v1997_v46  ;;  %v2328_v57 = vunpack.i.l.bf16 %v2327_v52  ;;  %v2329_v60 = vunpack.i.h.bf16 %v2327_v52 }
  0x94   : > { %2158 = vmatpush3.bf16.msra.mxu1 %v2155_v45  ;;  %298 = vmatprep.mubr.f32.mxu1 %v2461_v12  ;;  %v558_v55 = vsel %vm557_vm1, %v2323_v51, %v2313_v41  ;;  %v561_v56 = vsel %vm557_vm1, %v2324_v50, %v2318_v44  ;;  %v2611_v51 = vld [vmem:[%s2730_s1 + $0x40] sm:$0xff] }
  0x95   : > { %v2332_v58 = vpop.permute.xlu0 %2331  ;;  %2168 = vmatprep.subr.bf16.mxu0 %v2167_v53  ;;  %v2169_v59 = vpack.c.bf16 %v561_v56, %v558_v55  ;;  %2160 = vmatprep.subr.bf16.mxu1 %v2159_v13  ;;  %v560_v8 = vsel %vm557_vm1, %v2314_v40, %v2328_v57  ;;  %v563_v16 = vsel %vm557_vm1, %v2319_v43, %v2329_v60 }
  0x96   : > { %v2334_v61 = vunpack.i.h.bf16 %v2332_v58  ;;  %v2333_v62 = vunpack.i.l.bf16 %v2332_v58  ;;  %v2337_v63 = vpop.permute.xlu1 %2336  ;;  %v2171_v24 = vpack.c.bf16 %v563_v16, %v560_v8 }
  0x97   : > { %2000 = vmatmul.mubr.msk.f32.gmra.mrb[2].mxu1 %vm221_vm2, %v1998_v54  ;;  %2170 = vmatpush1.bf16.msra.mxu0 %v2169_v59  ;;  %v2339_v1 = vunpack.i.h.bf16 %v2337_v63  ;;  %v2338_v3 = vunpack.i.l.bf16 %v2337_v63 }
  0x98   : > { %2092 = vmatprep.mubr.msk.f32.mxu1 %vm221_vm2, %v1997_v46  ;;  %v755_v7 = vsel %vm753_vm3, %v2333_v62, %v2334_v61 }
  0x99   : > { %v2342_v0 = vpop.permute.xlu0 %2341  ;;  %v758_v5 = vsel %vm753_vm3, %v2338_v3, %v2339_v1 }
  0x9a   : > { %v2344_v9 = vunpack.i.h.bf16 %v2342_v0  ;;  %v2343_v10 = vunpack.i.l.bf16 %v2342_v0  ;;  %2009 = vmatmul.mubr.msk.f32.vlgmr.msra.gmra.mrb[0].mxu0 %vm221_vm2, %v2549_v6  ;;  %v2347_v11 = vpop.permute.xlu1 %2346  ;;  %v2175_v13 = vpack.c.bf16 %v758_v5, %v755_v7 }
  0x9b   : > { %2093 = vmatmul.mubr.msk.f32.vlgmr.msra.gmra.mrb[4].mxu1 %vm221_vm2, %v1998_v54  ;;  %646 = vmatprep.mubr.f32.mxu0 %v2461_v12  ;;  %v2348_v22 = vunpack.i.l.bf16 %v2347_v11  ;;  %v2349_v25 = vunpack.i.h.bf16 %v2347_v11 }
  0x9c   : > { %v754_v18 = vsel %vm753_vm3, %v2343_v10, %v2333_v62  ;;  %v757_v19 = vsel %vm753_vm3, %v2344_v9, %v2338_v3  ;;  %2162 = vmatpush1.bf16.msra.mxu1 %v2161_v14  ;;  %450 = vmatprep.mubr.f32.mxu1 %v2461_v12 }
  0x9d   : > { %v2177_v21 = vpack.c.bf16 %v757_v19, %v754_v18  ;;  %v2352_v23 = vpop.permute.xlu0 %2351  ;;  %2164 = vmatprep.subr.bf16.mxu1 %v2522_v15  ;;  %2176 = vmatprep.subr.bf16.mxu0 %v2175_v13  ;;  %v756_v33 = vsel %vm753_vm3, %v2334_v61, %v2348_v22  ;;  %v759_v37 = vsel %vm753_vm3, %v2339_v1, %v2349_v25  ;;  %v2626_v61 = vld [vmem:[%s2730_s1 + $0x48] sm:$0xff]  ;;  %v2637_v13 = vld [vmem:[%s2730_s1 + $0x50] sm:$0xff]  ;;  %v2652_v25 = vld [vmem:[%s2730_s1 + $0x58] sm:$0xff] }
  0x9e   : > { %v2354_v26 = vunpack.i.h.bf16 %v2352_v23  ;;  %v2353_v27 = vunpack.i.l.bf16 %v2352_v23  ;;  %2010 = vmatmul.mubr.msk.f32.gmra.mrb[2].mxu0 %vm221_vm2, %v2563_v17  ;;  %v2357_v2 = vpop.permute.xlu1 %2356  ;;  %v2179_v44 = vpack.c.bf16 %v759_v37, %v756_v33 }
  0x9f   : > { %2003 = vmatmul.mubr.msk.f32.vlgmr.msra.gmra.mrb[0].mxu1 %vm221_vm2, %v179_v20  ;;  %2178 = vmatpush1.bf16.msra.mxu0 %v2177_v21  ;;  %v2359_v4 = vunpack.i.h.bf16 %v2357_v2  ;;  %v2358_v14 = vunpack.i.l.bf16 %v2357_v2 }
  0xa0   : > { %2166 = vmatpush3.bf16.msra.mxu1 %v2522_v15  ;;  %836 = vmatprep.mubr.f32.mxu0 %v2461_v12  ;;  %v951_v30 = vsel %vm949_vm4, %v2353_v27, %v2354_v26 }
  0xa1   : > { %2172 = vmatprep.subr.bf16.mxu1 %v2171_v24  ;;  %v2362_v31 = vpop.permute.xlu0 %2361  ;;  %456 = vmatprep.mubr.f32.mxu1 %v2461_v12  ;;  %v954_v32 = vsel %vm949_vm4, %v2358_v14, %v2359_v4 }
  0xa2   : > { %v2364_v34 = vunpack.i.h.bf16 %v2362_v31  ;;  %v2363_v35 = vunpack.i.l.bf16 %v2362_v31  ;;  %2015 = vmatmul.mubr.msk.f32.vlgmr.msra.gmra.mrb[0].mxu0 %vm221_vm2, %v2581_v28  ;;  %v2367_v15 = vpop.permute.xlu1 %2366  ;;  %v2183_v36 = vpack.c.bf16 %v954_v32, %v951_v30 }
  0xa3   : > { %2004 = vmatmul.mubr.msk.f32.gmra.mrb[2].mxu1 %vm221_vm2, %v180_v29  ;;  %842 = vmatprep.mubr.f32.mxu0 %v2461_v12  ;;  %v2368_v42 = vunpack.i.l.bf16 %v2367_v15  ;;  %v2369_v45 = vunpack.i.h.bf16 %v2367_v15 }
  0xa4   : > { %v950_v39 = vsel %vm949_vm4, %v2363_v35, %v2353_v27  ;;  %v953_v40 = vsel %vm949_vm4, %v2364_v34, %v2358_v14  ;;  %2099 = vmatprep.mubr.msk.f32.mxu1 %vm221_vm2, %v179_v20  ;;  %2184 = vmatprep.subr.bf16.mxu0 %v2183_v36  ;;  %v2663_v35 = vld [vmem:[%s2730_s1 + $0x60] sm:$0xff] }
  0xa5   : > { %v2185_v41 = vpack.c.bf16 %v953_v40, %v950_v39  ;;  %v2372_v43 = vpop.permute.xlu0 %2371  ;;  %v952_v55 = vsel %vm949_vm4, %v2354_v26, %v2368_v42  ;;  %v955_v60 = vsel %vm949_vm4, %v2359_v4, %v2369_v45 }
  0xa6   : > { %v2374_v46 = vunpack.i.h.bf16 %v2372_v43  ;;  %v2373_v47 = vunpack.i.l.bf16 %v2372_v43  ;;  %2016 = vmatmul.mubr.msk.f32.gmra.mrb[2].mxu0 %vm221_vm2, %v2600_v38  ;;  %v2377_v48 = vpop.permute.xlu1 %2376  ;;  %v2187_v7 = vpack.c.bf16 %v955_v60, %v952_v55 }
  0xa7   : > { %2100 = vmatmul.mubr.msk.f32.vlgmr.msra.gmra.mrb[4].mxu1 %vm221_vm2, %v180_v29  ;;  %2186 = vmatpush1.bf16.msra.mxu0 %v2185_v41  ;;  %v2379_v49 = vunpack.i.h.bf16 %v2377_v48  ;;  %v2378_v50 = vunpack.i.l.bf16 %v2377_v48 }
  0xa8   : > { %2174 = vmatpush3.bf16.msra.mxu1 %v2171_v24  ;;  %1032 = vmatprep.mubr.f32.mxu0 %v2461_v12  ;;  %v1147_v52 = vsel %vm1145_vm5, %v2373_v47, %v2374_v46 }
  0xa9   : > { %2180 = vmatprep.subr.bf16.mxu1 %v2179_v44  ;;  %v2382_v53 = vpop.permute.xlu0 %2381  ;;  %2106 = vmatprep.mubr.msk.f32.mxu1 %vm221_vm2, %v2549_v6  ;;  %v1150_v54 = vsel %vm1145_vm5, %v2378_v50, %v2379_v49 }
  0xaa   : > { %v2384_v56 = vunpack.i.h.bf16 %v2382_v53  ;;  %v2383_v57 = vunpack.i.l.bf16 %v2382_v53  ;;  %2021 = vmatmul.mubr.msk.f32.vlgmr.msra.gmra.mrb[0].mxu0 %vm221_vm2, %v2611_v51  ;;  %v2387_v58 = vpop.permute.xlu1 %2386  ;;  %v2191_v59 = vpack.c.bf16 %v1150_v54, %v1147_v52 }
  0xab   : > { %1038 = vmatprep.mubr.f32.mxu0 %v2461_v12  ;;  %v2388_v3 = vunpack.i.l.bf16 %v2387_v58  ;;  %v2389_v0 = vunpack.i.h.bf16 %v2387_v58 }
  0xac   : > { %v1146_v62 = vsel %vm1145_vm5, %v2383_v57, %v2373_v47  ;;  %v1149_v63 = vsel %vm1145_vm5, %v2384_v56, %v2378_v50  ;;  %2192 = vmatprep.subr.bf16.mxu0 %v2191_v59  ;;  %v2037_v57 = vld [vmem:[%s2730_s1 + $0x70] sm:$0xff] }
  0xad   : > { %v2193_v1 = vpack.c.bf16 %v1149_v63, %v1146_v62  ;;  %v2392_v6 = vpop.permute.xlu0 %2391  ;;  %v1148_v19 = vsel %vm1145_vm5, %v2374_v46, %v2388_v3  ;;  %v1151_v24 = vsel %vm1145_vm5, %v2379_v49, %v2389_v0 }
  0xae   : > { %v2394_v5 = vunpack.i.h.bf16 %v2392_v6  ;;  %v2393_v8 = vunpack.i.l.bf16 %v2392_v6  ;;  %2022 = vmatmul.mubr.msk.f32.gmra.mrb[2].mxu0 %vm221_vm2, %v2626_v61  ;;  %v2397_v9 = vpop.permute.xlu1 %2396  ;;  %v2038_v6 = vld [vmem:[%s2730_s1 + $0x78] sm:$0xff] }
  0xaf   : > { %2107 = vmatmul.mubr.msk.f32.vlgmr.msra.gmra.mrb[4].mxu1 %vm221_vm2, %v2563_v17  ;;  %2194 = vmatpush1.bf16.msra.mxu0 %v2193_v1  ;;  %v2399_v10 = vunpack.i.h.bf16 %v2397_v9  ;;  %v2398_v11 = vunpack.i.l.bf16 %v2397_v9 }
  0xb0   : > { %2182 = vmatpush3.bf16.msra.mxu1 %v2179_v44  ;;  %1228 = vmatprep.mubr.f32.mxu0 %v2461_v12  ;;  %v1343_v16 = vsel %vm1341_vm6, %v2393_v8, %v2394_v5  ;;  %v2032_v44 = vld [vmem:[%s2730_s1 + $0x68] sm:$0xff] }
  0xb1   : > { %2188 = vmatprep.subr.bf16.mxu1 %v2187_v7  ;;  %v2402_v18 = vpop.permute.xlu0 %2401  ;;  %2113 = vmatprep.mubr.msk.f32.mxu1 %vm221_vm2, %v2581_v28  ;;  %v1346_v17 = vsel %vm1341_vm6, %v2398_v11, %v2399_v10  ;;  %v2195_v28 = vpack.c.bf16 %v1151_v24, %v1148_v19 }
  0xb2   : > { %v2404_v20 = vunpack.i.h.bf16 %v2402_v18  ;;  %v2403_v21 = vunpack.i.l.bf16 %v2402_v18  ;;  %2027 = vmatmul.mubr.msk.f32.vlgmr.msra.gmra.mrb[0].mxu0 %vm221_vm2, %v2637_v13  ;;  %v2407_v22 = vpop.permute.xlu1 %2406  ;;  %v2199_v23 = vpack.c.bf16 %v1346_v17, %v1343_v16  ;;  %v2044_v17 = vld [vmem:[%s2730_s1 + $0x88] sm:$0xff] }
  0xb3   : > { %1234 = vmatprep.mubr.f32.mxu0 %v2461_v12  ;;  %v2408_v4 = vunpack.i.l.bf16 %v2407_v22  ;;  %v2409_v29 = vunpack.i.h.bf16 %v2407_v22 }
  0xb4   : > { %v1342_v26 = vsel %vm1341_vm6, %v2403_v21, %v2393_v8  ;;  %v1345_v27 = vsel %vm1341_vm6, %v2404_v20, %v2398_v11  ;;  %2200 = vmatprep.subr.bf16.mxu0 %v2199_v23 }
  0xb5   : > { %v2201_v2 = vpack.c.bf16 %v1345_v27, %v1342_v26  ;;  %v2412_v14 = vpop.permute.xlu0 %2411  ;;  %v1347_v43 = vsel %vm1341_vm6, %v2399_v10, %v2409_v29 }
  0xb6   : > { %v2414_v30 = vunpack.i.h.bf16 %v2412_v14  ;;  %v2413_v31 = vunpack.i.l.bf16 %v2412_v14  ;;  %2028 = vmatmul.mubr.msk.f32.gmra.mrb[2].mxu0 %vm221_vm2, %v2652_v25  ;;  %v2417_v32 = vpop.permute.xlu1 %2416 }
  0xb7   : > { %2114 = vmatmul.mubr.msk.f32.vlgmr.msra.gmra.mrb[4].mxu1 %vm221_vm2, %v2600_v38  ;;  %2202 = vmatpush1.bf16.msra.mxu0 %v2201_v2  ;;  %v2419_v33 = vunpack.i.h.bf16 %v2417_v32  ;;  %v2418_v34 = vunpack.i.l.bf16 %v2417_v32  ;;  %v1344_v38 = vsel %vm1341_vm6, %v2394_v5, %v2408_v4 }
  0xb8   : > { %2190 = vmatpush3.bf16.msra.mxu1 %v2187_v7  ;;  %1424 = vmatprep.mubr.f32.mxu0 %v2461_v12  ;;  %v1539_v15 = vsel %vm1537_vm7, %v2413_v31, %v2414_v30  ;;  %v2203_v50 = vpack.c.bf16 %v1347_v43, %v1344_v38 }
  0xb9   : > { %2196 = vmatprep.subr.bf16.mxu1 %v2195_v28  ;;  %v2422_v36 = vpop.permute.xlu0 %2421  ;;  %2120 = vmatprep.mubr.msk.f32.mxu1 %vm221_vm2, %v2611_v51  ;;  %v1542_v37 = vsel %vm1537_vm7, %v2418_v34, %v2419_v33 }
  0xba   : > { %v2424_v39 = vunpack.i.h.bf16 %v2422_v36  ;;  %v2423_v40 = vunpack.i.l.bf16 %v2422_v36  ;;  %2033 = vmatmul.mubr.msk.f32.vlgmr.msra.gmra.mrb[0].mxu0 %vm221_vm2, %v2663_v35  ;;  %v2427_v41 = vpop.permute.xlu1 %2426  ;;  %v2207_v42 = vpack.c.bf16 %v1542_v37, %v1539_v15 }
  0xbb   : > { %1430 = vmatprep.mubr.f32.mxu0 %v2461_v12  ;;  %v2428_v48 = vunpack.i.l.bf16 %v2427_v41  ;;  %v2429_v51 = vunpack.i.h.bf16 %v2427_v41 }
  0xbc   : > { %v1538_v45 = vsel %vm1537_vm7, %v2423_v40, %v2413_v31  ;;  %v1541_v46 = vsel %vm1537_vm7, %v2424_v39, %v2418_v34  ;;  %2208 = vmatprep.subr.bf16.mxu0 %v2207_v42 }
  0xbd   : > { %v2209_v47 = vpack.c.bf16 %v1541_v46, %v1538_v45  ;;  %v2432_v49 = vpop.permute.xlu0 %2431  ;;  %v1543_v3 = vsel %vm1537_vm7, %v2419_v33, %v2429_v51 }
  0xbe   : > { %v2434_v52 = vunpack.i.h.bf16 %v2432_v49  ;;  %v2433_v53 = vunpack.i.l.bf16 %v2432_v49  ;;  %2034 = vmatmul.mubr.msk.f32.gmra.mrb[2].mxu0 %vm221_vm2, %v2032_v44  ;;  %v2437_v54 = vpop.permute.xlu1 %2436 }
  0xbf   : > { %2121 = vmatmul.mubr.msk.f32.vlgmr.msra.gmra.mrb[4].mxu1 %vm221_vm2, %v2626_v61  ;;  %2210 = vmatpush1.bf16.msra.mxu0 %v2209_v47  ;;  %v2439_v55 = vunpack.i.h.bf16 %v2437_v54  ;;  %v2438_v56 = vunpack.i.l.bf16 %v2437_v54  ;;  %v1540_v61 = vsel %vm1537_vm7, %v2414_v30, %v2428_v48 }
  0xc0   : > { %2198 = vmatpush3.bf16.msra.mxu1 %v2195_v28  ;;  %1620 = vmatprep.mubr.f32.mxu0 %v2461_v12  ;;  %v1735_v58 = vsel %vm1733_vm8, %v2433_v53, %v2434_v52  ;;  %v2211_v9 = vpack.c.bf16 %v1543_v3, %v1540_v61 }
  0xc1   : > { %2204 = vmatprep.subr.bf16.mxu1 %v2203_v50  ;;  %v2442_v59 = vpop.permute.xlu0 %2441  ;;  %2127 = vmatprep.mubr.msk.f32.mxu1 %vm221_vm2, %v2637_v13  ;;  %v1738_v60 = vsel %vm1733_vm8, %v2438_v56, %v2439_v55  ;;  %v2043_v13 = vld [vmem:[%s2730_s1 + $0x80] sm:$0xff] }
  0xc2   : > { %v2444_v62 = vunpack.i.h.bf16 %v2442_v59  ;;  %v2443_v63 = vunpack.i.l.bf16 %v2442_v59  ;;  %2039 = vmatmul.mubr.msk.f32.vlgmr.msra.gmra.mrb[0].mxu0 %vm221_vm2, %v2037_v57  ;;  %v2215_v1 = vpack.c.bf16 %v1738_v60, %v1735_v58  ;;  %v2447_v7 = vpop.permute.xlu1 %2446 }
  0xc3   : > { %1626 = vmatprep.mubr.f32.mxu0 %v2461_v12  ;;  %v2449_v10 = vunpack.i.h.bf16 %v2447_v7  ;;  %v2448_v11 = vunpack.i.l.bf16 %v2447_v7 }
  0xc4   : > { %v1734_v0 = vsel %vm1733_vm8, %v2443_v63, %v2433_v53  ;;  %v1737_v5 = vsel %vm1733_vm8, %v2444_v62, %v2438_v56  ;;  %2216 = vmatprep.subr.bf16.mxu0 %v2215_v1 }
  0xc5   : > { %v2217_v8 = vpack.c.bf16 %v1737_v5, %v1734_v0  ;;  %v1736_v16 = vsel %vm1733_vm8, %v2434_v52, %v2448_v11  ;;  %v1739_v18 = vsel %vm1733_vm8, %v2439_v55, %v2449_v10 }
  0xc6   : > { %2040 = vmatmul.mubr.msk.f32.gmra.mrb[2].mxu0 %vm221_vm2, %v2038_v6  ;;  %v2219_v19 = vpack.c.bf16 %v1739_v18, %v1736_v16 }
  0xc7   : > { %2128 = vmatmul.mubr.msk.f32.vlgmr.msra.gmra.mrb[4].mxu1 %vm221_vm2, %v2652_v25  ;;  %2218 = vmatpush1.bf16.msra.mxu0 %v2217_v8 }
  0xc8   : > { %2206 = vmatpush3.bf16.msra.mxu1 %v2203_v50  ;;  %1816 = vmatprep.mubr.f32.mxu0 %v2461_v12 }
  0xc9   : > { %2212 = vmatprep.subr.bf16.mxu1 %v2211_v9  ;;  %2134 = vmatprep.mubr.msk.f32.mxu1 %vm221_vm2, %v2663_v35 }
  0xca   : > { %2045 = vmatmul.mubr.msk.f32.vlgmr.msra.gmra.mrb[0].mxu0 %vm221_vm2, %v2043_v13 }
  0xcb   : > { %1822 = vmatprep.mubr.f32.mxu0 %v2461_v12 }
  0xce   : > { %2046 = vmatmul.mubr.msk.f32.gmra.mrb[2].mxu0 %vm221_vm2, %v2044_v17 }
  0xcf   : > { %2135 = vmatmul.mubr.msk.f32.vlgmr.msra.gmra.mrb[4].mxu1 %vm221_vm2, %v2032_v44 }
  0xd0   : > { %2214 = vmatpush3.bf16.msra.mxu1 %v2211_v9  ;;  %2141 = vmatprep.mubr.msk.f32.mxu1 %vm221_vm2, %v2037_v57 }
  0xd1   : > { %2220 = vmatprep.subr.bf16.mxu1 %v2219_v19 }
  0xd2   : > { %v1915_v24 = vpop.permute.xlu0 %1914 }
  0xd3   : > { %v1920_v28 = vpop.permute.xlu1 %1919 }
  0xd7   : > { %2142 = vmatmul.mubr.msk.f32.vlgmr.msra.gmra.mrb[4].mxu1 %vm221_vm2, %v2038_v6 }
  0xd8   : > { %2222 = vmatpush3.bf16.msra.mxu1 %v2219_v19  ;;  %2148 = vmatprep.mubr.msk.f32.mxu1 %vm221_vm2, %v2043_v13 }
  0xdf   : > { %2149 = vmatmul.mubr.msk.f32.vlgmr.msra.gmra.mrb[4].mxu1 %vm221_vm2, %v2044_v17 }
 0x172   : > { %v452_v12 = vpop.f32.mrb[0].mxu1 }
 0x173   : > { %v454_v20 = vpop.f32.mrb[1].mxu1 }
 0x176   : > { %v458_v21 = vpop.f32.mrb[2].mxu1 }
 0x177   : > { %v460_v22 = vpop.f32.mrb[3].mxu1 }
 0x19d   : > { %v1818_v23 = vpop.f32.mrb[0].mxu0 }
 0x19e   : > { %v2223_v25 = vadd.f32 %v1818_v23, %v452_v12  ;;  %v1820_v26 = vpop.f32.mrb[1].mxu0 }
 0x19f   : > { %v2224_v27 = vadd.f32 %v1820_v26, %v454_v20 }
 0x1a0   : > { %v1922_v2 = vadd.f32 %v2223_v25, %v1915_v24 }
 0x1a1   : > { %v1923_v4 = vadd.f32 %v2224_v27, %v1915_v24  ;;  %v1824_v14 = vpop.f32.mrb[2].mxu0 }
 0x1a2   : > { %1928 = vst [vmem:[%s170_s19] sm:$0xff] %v1922_v2  ;;  %v2225_v29 = vadd.f32 %v1824_v14, %v458_v21  ;;  %v1826_v30 = vpop.f32.mrb[3].mxu0 }
 0x1a3   : > { %1929 = vst [vmem:[%s170_s19 + $0x8] sm:$0xff] %v1923_v4  ;;  %v2226_v31 = vadd.f32 %v1826_v30, %v460_v22 }
 0x1a4   : > { %v1925_v32 = vadd.f32 %v2225_v29, %v1920_v28 }
 0x1a5   : > { %v1926_v33 = vadd.f32 %v2226_v31, %v1920_v28 }
 0x1a6   : > { %1931 = vst [vmem:[%s170_s19 + $0x18] sm:$0xff] %v1925_v32 }
 0x1a7   : > { %1932 = vst [vmem:[%s170_s19 + $0x20] sm:$0xff] %v1926_v33 }
 0x1b2   : > { %v2150_v34 = vpop.f32.mrb[4].mxu1 }
 0x1b3   : > { %v1927_v35 = vadd.f32 %v2150_v34, %v1920_v28  ;;  %v1895_v15 = vpop.f32.mrb[5].mxu1 }
 0x1b4   : > { %v1924_v36 = vadd.f32 %v1915_v24, %v1895_v15 }
 0x1b5   : > { %1933 = vst [vmem:[%s170_s19 + $0x28] sm:$0xff] %v1927_v35 }
 0x1b6   : > { %1930 = vst [vmem:[%s170_s19 + $0x10] sm:$0xff] %v1924_v36 }
 0x1b7 PF: > { %s13_s12 = sadd.s32 1, %s2458_s12  }
 0x1b8   : > { %p10_p4 = scmp.ge.s32.totalorder %s13_s12, 4  }
 0x1ba   :  { %12 = sbr.rel (!%p10_p4) target bundleno = 1 (0x1), region = 70 }

</bundles_post_ra>
